<compile_context>
chip_gen: v5e
topology: v5e:2x2
jax: 0.10.0
libtpu: 0.0.40
codegen_flags: <defaults>
</compile_context>

<pallas_src>
import functools
import math

import jax
import jax.numpy as jnp
from jax.experimental import pallas as pl
from jax.experimental.pallas import tpu as pltpu


_LANE = 128
_MAX_COLS = 1024                       # lane width of the slab (multiple of 128)
_TARGET_BLOCK_BYTES = 2 * 1024 * 1024  # ~2 MiB per buffer -> ~85% of HBM roofline


def _sublane_multiple(dtype):
    # Minimum sublane tiling: 8 for 32-bit, 16 for 16-bit, 32 for 8-bit dtypes.
    bits = jnp.dtype(dtype).itemsize * 8
    return max(8, 256 // max(bits, 8))


def _round_up(x, m):
    return ((x + m - 1) // m) * m


def _lambda_kernel(func, x_ref, o_ref):
    # Apply the wrapped function on the whole VMEM tile (element-wise).
    o_ref[...] = func(x_ref[...]).astype(o_ref.dtype)


class Lambda:
    """
    Input: A Function (shape-preserving and element-wise for the kernel path)
    Returns: A callable that can be composed like an nn.Module.
    """

    # TODO(synk): non-elementwise funcs (e.g. view/flatten lambdas) are pure
    # reshapes with no compute; they belong outside the kernel.

    def __init__(self, func):
        self.func = func

    def __call__(self, x):
        orig_shape = x.shape
        in_dtype = x.dtype
        # Derive output dtype without running the function (func may cast).
        out_dtype = jax.eval_shape(
            self.func, jax.ShapeDtypeStruct(orig_shape, in_dtype)
        ).dtype

        n = int(math.prod(orig_shape)) if orig_shape else 1
        # Flatten (always a real shape change -> fresh intermediate; safe to
        # alias/donate to the output below).
        flat = x.reshape(n)

        itemsize = max(jnp.dtype(in_dtype).itemsize, jnp.dtype(out_dtype).itemsize)
        sub = max(_sublane_multiple(in_dtype), _sublane_multiple(out_dtype))

        # Lane-dense slab: cols is a large multiple of 128 so output stores are
        # full-width unmasked vst; for small inputs pick cols so that rows fill
        # one sublane-aligned block with little or no padding.
        if n >= _MAX_COLS * sub:
            cols = _MAX_COLS
        else:
            cols = min(_MAX_COLS, max(_LANE, _round_up(pl.cdiv(n, sub), _LANE)))

        rows = pl.cdiv(n, cols)
        block_rows = max(sub, (_TARGET_BLOCK_BYTES // (cols * itemsize) // sub) * sub)
        block_rows = min(block_rows, _round_up(rows, sub))
        padded_rows = _round_up(rows, block_rows)
        padded_n = padded_rows * cols

        if padded_n != n:
            flat = jnp.pad(flat, (0, padded_n - n))
        x2d = flat.reshape(padded_rows, cols)

        grid = (padded_rows // block_rows,)
        kernel = functools.partial(_lambda_kernel, self.func)

        # Alias input HBM buffer to the output when dtypes match (no second
        # HBM allocation / writeback buffer).
        alias = {0: 0} if out_dtype == in_dtype else {}

        out2d = pl.pallas_call(
            kernel,
            out_shape=jax.ShapeDtypeStruct((padded_rows, cols), out_dtype),
            grid_spec=pltpu.PrefetchScalarGridSpec(
                num_scalar_prefetch=0,
                grid=grid,
                in_specs=[pl.BlockSpec((block_rows, cols), lambda i: (i, 0))],
                out_specs=pl.BlockSpec((block_rows, cols), lambda i: (i, 0)),
            ),
            compiler_params=pltpu.CompilerParams(
                dimension_semantics=("parallel",),
            ),
            input_output_aliases=alias,
        )(x2d)

        if padded_n != n:
            out = out2d.reshape(padded_n)[:n].reshape(orig_shape)
        else:
            out = out2d.reshape(orig_shape)
        return out


if __name__ == "__main__":
    key = jax.random.PRNGKey(0)

    # 1) Small NCHW feature map, f32, ReLU lambda (as used in the arch:
    #    Lambda(lambda t: F.relu(t))).  2*4*16*16 = 2048 elements maps to an
    #    exactly-aligned (8, 256) slab -> no padding, single grid step.
    x = jax.random.normal(key, (2, 4, 16, 16), dtype=jnp.float32)
    relu_lambda = Lambda(lambda t: jnp.maximum(t, 0.0))
    y = relu_lambda(x)
    jax.block_until_ready(y)
    y_ref = jnp.maximum(x, 0.0)
    assert y.shape == x.shape and y.dtype == x.dtype
    assert jnp.allclose(y, y_ref), "relu mismatch vs reference"

    # 2) Odd-sized bf16 tensor -> exercises the padded / ragged-tail path and
    #    the 16-sublane bf16 tiling.
    x2 = jax.random.normal(jax.random.PRNGKey(1), (3, 5, 7)).astype(jnp.bfloat16)
    affine_lambda = Lambda(lambda t: t * 2.0 + 1.0)
    y2 = affine_lambda(x2)
    jax.block_until_ready(y2)
    y2_ref = x2 * 2.0 + 1.0
    assert y2.shape == x2.shape and y2.dtype == x2.dtype
    assert jnp.allclose(y2.astype(jnp.float32), y2_ref.astype(jnp.float32)), \
        "affine mismatch vs reference"

    # 3) Dtype-changing lambda -> exercises the eval_shape out-dtype path
    #    (no input/output aliasing in this case).
    x3 = jax.random.normal(jax.random.PRNGKey(2), (8, 128), dtype=jnp.float32)
    cast_lambda = Lambda(lambda t: t.astype(jnp.bfloat16))
    y3 = cast_lambda(x3)
    jax.block_until_ready(y3)
    assert y3.shape == x3.shape and y3.dtype == jnp.bfloat16
    assert jnp.allclose(y3.astype(jnp.float32),
                        x3.astype(jnp.bfloat16).astype(jnp.float32)), \
        "cast mismatch vs reference"

    print("KERNEL_OK")
</pallas_src>

<mosaic_0001>
module attributes {stable_mosaic.version = 11 : i64} {
  func.func @_lambda_kernel(%arg0: i32, %arg1: memref<8x256xf32, #tpu.memory_space<vmem>>, %arg2: memref<8x256xf32, #tpu.memory_space<vmem>>) attributes {dimension_semantics = [#tpu.dimension_semantics<parallel>], iteration_bounds = array<i64: 1>, scalar_prefetch = 0 : i64, scratch_operands = 0 : i64, tpu.core_type = #tpu.core_type<tc>, window_params = [{transform_indices = @transform_0, window_bounds = array<i64: 8, 256>}, {transform_indices = @transform_1, window_bounds = array<i64: 8, 256>}]} {
    %c0 = arith.constant 0 : index
    %c0_0 = arith.constant 0 : index
    %0 = vector.load %arg1[%c0, %c0_0] : memref<8x256xf32, #tpu.memory_space<vmem>>, vector<8x256xf32>
    %cst = arith.constant 0.000000e+00 : f32
    %1 = vector.broadcast %cst : f32 to vector<8x256xf32>
    %2 = arith.maximumf %0, %1 : vector<8x256xf32>
    %c0_1 = arith.constant 0 : index
    %c0_2 = arith.constant 0 : index
    %3 = vector.load %arg2[%c0_1, %c0_2] : memref<8x256xf32, #tpu.memory_space<vmem>>, vector<8x256xf32>
    tpu.vector_store %arg2[%c0_1, %c0_2], %2 {strides = array<i32>} : memref<8x256xf32, #tpu.memory_space<vmem>>, vector<8x256xf32>,
    return
  }
  func.func @transform_0(%arg0: i32) -> (i32, i32) {
    %c0_i32 = arith.constant 0 : i32
    %c0_i32_0 = arith.constant 0 : i32
    return %arg0, %c0_i32 : i32, i32
  }
  func.func @transform_1(%arg0: i32) -> (i32, i32) {
    %c0_i32 = arith.constant 0 : i32
    %c0_i32_0 = arith.constant 0 : i32
    return %arg0, %c0_i32 : i32, i32
  }
}

</mosaic_0001>

<bundles_post_ra>
// kernel: tpu_custom_call.1
= control target key start
LH: loop header
LB: loop body
LE: loop exit
PB: predicated region body
PF: predicated region fallthrough
CT: control target
= control target key end

     0   :  { %6 = vsyncpa [#allocation3], 0  ;;  %s118_s0 = inlined_call_operand.hbm [shape: f32[8,256], index: 0, kind: input, shape index: {}, may-alias: {0,1}]   ;;  %s119_s1 = inlined_call_operand.hbm [shape: f32[8,256], index: 1, kind: output, shape index: {}, may-alias: {0,1}]  }
   0x1   :  { %7 = vsyncpa [#allocation4], 0  ;;  %s13_s8 = sshll.u32 %s118_s0, 4  ;;  %s100_s9 = smov [#allocation2]   ;;  %s14_s8 = int_to_ptr.hbm [resolvable:$true] %s13_s8 }
   0x2   :  { %s15_s10 = sshll.u32 %s100_s9, 4  ;;  %s16_s10 = int_to_ptr.vmem [resolvable:$true] %s15_s10 }
   0x3   :  { %18 = dma.hbm_to_vmem [thread:$0]  %s14_s8, 256, %s16_s10, [#allocation3]  }
   0x4   :  { %96 = dma.done.wait [#allocation3], 256  }
   0x5   :  { %97 = vsyncadd [#allocation3], 4294967040  ;;  %s101_s11 = smov [#allocation5]   ;;  %s36_s15 = sshll.u32 %s119_s1, 4  ;;  %v23_v0 = vld [vmem:[#allocation2] sm:$0xff]  ;;  %v24_v1 = vld [vmem:[#allocation2 + $0x8] sm:$0xff]  ;;  %s37_s15 = int_to_ptr.hbm [resolvable:$true] %s36_s15 }
   0x6   :  { %s34_s12 = sshll.u32 %s101_s11, 4  ;;  %v25_v2 = vmax.f32 %v23_v0, 0.0  ;;  %v26_v3 = vmax.f32 %v24_v1, 0.0  ;;  %s35_s12 = int_to_ptr.vmem [resolvable:$true] %s34_s12 }
   0x8   :  { %27 = vst [vmem:[#allocation5] sm:$0xff] %v25_v2 }
   0x9   :  { %28 = vst [vmem:[#allocation5 + $0x8] sm:$0xff] %v26_v3 }
   0xa   :  { %39 = dma.vmem_to_hbm [thread:$0]  %s35_s12, 256, %s37_s15, [#allocation4]  }
   0xb   :  { %98 = dma.done.wait [#allocation4], 256  }
   0xc   :  { %99 = vsyncadd [#allocation4], 4294967040 }
   0xd   :  { %44 = vsyncpa [#allocation3], 1 }
   0xe   :  { %45 = vsyncpa [#allocation4], 1 }

</bundles_post_ra>
